<compile_context>
chip_gen: v7x
topology: tpu7x:2x2x1
jax: 0.10.0
libtpu: 0.0.40
codegen_flags: <defaults>
</compile_context>

<pallas_src>
import math

import jax
import jax.numpy as jnp
from jax.experimental import pallas as pl
from jax.experimental.pallas import tpu as pltpu

LANES = 128            # lane width of a vreg (last dim must be lane-dense)
FAST_PATH_ELEMS = 65536  # below this, fused XLA multiply beats kernel launch


def _round_up(a: int, b: int) -> int:
    return ((a + b - 1) // b) * b


def _scale_kernel(nf_ref, x_ref, o_ref):
    # nf_ref: (1,) float32 scalar in SMEM; x_ref / o_ref: (tile_rows, 128) VMEM.
    o_ref[...] = x_ref[...] * nf_ref[0].astype(x_ref.dtype)


def _tile_bytes_for_device() -> int:
    """Per-block-buffer tile budget, chosen per TPU generation."""
    try:
        kind = jax.devices()[0].device_kind.lower()
    except Exception:
        kind = ""
    # v5e: 16 MiB default scoped VMEM and 0.82 TB/s HBM — 1 MiB tiles already
    # hide per-step overhead; don't risk the scoped limit.
    if "v5 lite" in kind or "v5lite" in kind or "v5e" in kind:
        return 1 << 20
    # v6e / v7x: 4 MiB per buffer; 4 buffers x 4 MiB = 16 MiB, well inside the
    # 32 MiB scoped default and under v7x's 64 MiB physical VMEM.
    return 4 << 20


def scale_by_noise(loss: jax.Array, noise_factor) -> jax.Array:
    """Pallas implementation of NoiseModel.forward: loss * noise_factor."""
    orig_shape = loss.shape
    dtype = loss.dtype
    n = int(math.prod(orig_shape)) if orig_shape else 1

    nf = jnp.asarray(noise_factor, dtype=jnp.float32)

    # Fast paths:
    #  * non-float dtypes: let jnp handle torch-style promotion to float32.
    #  * tiny inputs (incl. 0-dim scalar loss): skip the kernel entirely.
    if not jnp.issubdtype(dtype, jnp.floating):
        return loss * nf
    if n < FAST_PATH_ELEMS:
        return loss * nf.astype(dtype)

    itemsize = jnp.dtype(dtype).itemsize
    packing = max(1, 4 // itemsize)   # sub-32-bit dtypes pack along sublanes
    sublanes = 8 * packing            # 8 (f32), 16 (bf16), 32 (int8/fp8)

    flat = loss.reshape(-1)
    padded_n = _round_up(n, LANES)
    if padded_n != n:                 # at most 127 extra elements
        flat = jnp.pad(flat, (0, padded_n - n))
    rows = padded_n // LANES
    x2d = flat.reshape(rows, LANES)

    tile_bytes = _tile_bytes_for_device()
    tile_rows = max(sublanes,
                    (tile_bytes // (LANES * itemsize)) // sublanes * sublanes)
    # Keep >=2 grid steps for medium inputs so both v7x TensorCores get work.
    if rows > sublanes:
        tile_rows = min(tile_rows, _round_up(pl.cdiv(rows, 2), sublanes))
    grid = (pl.cdiv(rows, tile_rows),)  # ragged final block handled by Pallas

    nf1 = nf.reshape((1,))

    out2d = pl.pallas_call(
        _scale_kernel,
        out_shape=jax.ShapeDtypeStruct((rows, LANES), dtype),
        grid=grid,
        in_specs=[
            pl.BlockSpec(memory_space=pltpu.MemorySpace.SMEM),   # noise_factor
            pl.BlockSpec((tile_rows, LANES), lambda i: (i, 0)),  # loss tiles
        ],
        out_specs=pl.BlockSpec((tile_rows, LANES), lambda i: (i, 0)),
        compiler_params=pltpu.CompilerParams(
            dimension_semantics=("parallel",),
            vmem_limit_bytes=32 << 20,
        ),
    )(nf1, x2d)

    out_flat = out2d.reshape(-1)
    if padded_n != n:
        out_flat = out_flat[:n]
    return out_flat.reshape(orig_shape)


class NoiseModelPallas:
    """Mirror of the PyTorch NoiseModel module."""

    def __init__(self, noise_factor: float = 0.1):
        # torch.nn.Parameter(torch.tensor(noise_factor, dtype=torch.float32))
        self.noise_factor = jnp.asarray(noise_factor, dtype=jnp.float32)

    def __call__(self, loss: jax.Array) -> jax.Array:
        return scale_by_noise(loss, self.noise_factor)


if __name__ == "__main__":
    key = jax.random.PRNGKey(0)
    k1, k2, k3 = jax.random.split(key, 3)

    model = NoiseModelPallas(noise_factor=0.1)

    # 1) Small NCHW-like "loss" tensor (2*4*16*16 = 2048 elems) — fast path.
    small = jax.random.normal(k1, (2, 4, 16, 16), dtype=jnp.float32)
    out_small = jax.block_until_ready(model(small))
    assert out_small.shape == small.shape and out_small.dtype == small.dtype
    assert jnp.allclose(out_small, small * jnp.float32(0.1), rtol=1e-6, atol=1e-6)

    # 2) Larger loss exercising the tiled Pallas path (>=2 grid steps).
    big = jax.random.normal(k2, (2, 4, 128, 128), dtype=jnp.float32)
    out_big = jax.block_until_ready(model(big))
    assert out_big.shape == big.shape and out_big.dtype == big.dtype
    assert jnp.allclose(out_big, big * jnp.float32(0.1), rtol=1e-6, atol=1e-6)

    # 3) Ragged size (n % 128 != 0) exercising the lane-remainder pad and the
    #    masked final grid block.
    ragged = jax.random.normal(k3, (1000, 173), dtype=jnp.float32)
    out_ragged = jax.block_until_ready(model(ragged))
    assert out_ragged.shape == ragged.shape and out_ragged.dtype == ragged.dtype
    assert jnp.allclose(out_ragged, ragged * jnp.float32(0.1), rtol=1e-6, atol=1e-6)

    print("KERNEL_OK")
</pallas_src>

<mosaic_0001>
module attributes {stable_mosaic.version = 11 : i64} {
  func.func @_scale_kernel(%arg0: i32, %arg1: memref<1xf32, #tpu.memory_space<smem>>, %arg2: memref<512x128xf32, #tpu.memory_space<vmem>>, %arg3: memref<512x128xf32, #tpu.memory_space<vmem>>) attributes {dimension_semantics = [#tpu.dimension_semantics<parallel>], iteration_bounds = array<i64: 2>, scalar_prefetch = 0 : i64, scratch_operands = 0 : i64, tpu.core_type = #tpu.core_type<tc>, window_params = [{transform_indices = @transform_0, window_bounds = array<i64: 1>}, {transform_indices = @transform_1, window_bounds = array<i64: 512, 128>}, {transform_indices = @transform_2, window_bounds = array<i64: 512, 128>}]} {
    %c0 = arith.constant 0 : index
    %c0_0 = arith.constant 0 : index
    %0 = vector.load %arg2[%c0, %c0_0] : memref<512x128xf32, #tpu.memory_space<vmem>>, vector<512x128xf32>
    %c0_1 = arith.constant 0 : index
    %1 = memref.load %arg1[%c0_1] : memref<1xf32, #tpu.memory_space<smem>>
    %2 = vector.broadcast %1 : f32 to vector<512x128xf32>
    %3 = arith.mulf %0, %2 : vector<512x128xf32>
    %c0_2 = arith.constant 0 : index
    %c0_3 = arith.constant 0 : index
    %4 = vector.load %arg3[%c0_2, %c0_3] : memref<512x128xf32, #tpu.memory_space<vmem>>, vector<512x128xf32>
    tpu.vector_store %arg3[%c0_2, %c0_3], %3 {strides = array<i32>} : memref<512x128xf32, #tpu.memory_space<vmem>>, vector<512x128xf32>,
    return
  }
  func.func @transform_0(%arg0: i32) -> i32 {
    %c0_i32 = arith.constant 0 : i32
    %c0_i32_0 = arith.constant 0 : i32
    return %c0_i32 : i32
  }
  func.func @transform_1(%arg0: i32) -> (i32, i32) {
    %c0_i32 = arith.constant 0 : i32
    %c0_i32_0 = arith.constant 0 : i32
    return %arg0, %c0_i32 : i32, i32
  }
  func.func @transform_2(%arg0: i32) -> (i32, i32) {
    %c0_i32 = arith.constant 0 : i32
    %c0_i32_0 = arith.constant 0 : i32
    return %arg0, %c0_i32 : i32, i32
  }
}

</mosaic_0001>

<bundles_post_ra>
// kernel: tpu_custom_call.1
= control target key start
LH: loop header
LB: loop body
LE: loop exit
PB: predicated region body
PF: predicated region fallthrough
CT: control target
= control target key end

     0   :  { %s995_s0 = inlined_call_operand.<no memory space> [shape: f32[1], index: 0, kind: input, shape index: {}]   ;;  %s996_s1 = inlined_call_operand.hbm [shape: f32[1024,128], index: 1, kind: input, shape index: {}]   ;;  %s997_s2 = inlined_call_operand.hbm [shape: f32[1024,128], index: 2, kind: output, shape index: {}]  }
   0x1   :  { %7 = sst [smem:[#allocation2]] %s995_s0 }
   0x2   :  { %8 = vsyncpa [#allocation4], 0 }
   0x3   :  { %10 = vsyncpa [#allocation4 + $0x1], 0 }
   0x4   :  { %11 = vsyncpa [#allocation5], 0 }
   0x5   :  { %13 = vsyncpa [#allocation5 + $0x1], 0  ;;  %s634_s11 = smov 0   ;;  %s636_s12 = smov 0  }
   0x6   :  { %s638_s13 = smov 0   ;;  %s640_s14 = smov 0  }
   0x7 LB: > { %s655_s0 = sadd.s32 4294967295, %s608_s14   ;;  %s446_s15 = sadd.s32 4294967294, %s608_s14   ;;  %s608_s14 = sphi %s640_s14, %s1010_s14   ;;  %s604_s13 = sphi %s638_s13, %s1009_s13   ;;  %s600_s12 = sphi %s636_s12, %s1008_s12   ;;  %s596_s11 = sphi %s634_s11, %s1007_s11  }
   0x8   : > { %s659_s16 = sadd.s32 1, %s608_s14   ;;  %s47_s17 = sadd.s32 1, %s604_s13 }
   0x9   : > { %s44_s18 = ssub.s32 %s608_s14, %s659_s16  ;;  %p54_p0 = scmp.ne.s32.totalorder %s604_s13, %s600_s12 }
   0xa   : > { %p45_p1 = scmp.eq.s32.totalorder %s44_s18, 0  ;;  %p55_p2 = scmp.eq.s32.totalorder %s608_s14, 0 }
   0xb   : > { %p60_p3 = scmp.ne.s32.totalorder %s600_s12, %s596_s11  ;;  %p61_p4 = scmp.eq.s32.totalorder %s655_s0, 0 }
   0xc   : > { %s671_s19 = scalar_select %p45_p1, %s604_s13, %s47_s17  }
   0xd   : > { %p673_p5 = por %p55_p2, %p54_p0  ;;  %p677_p6 = por %p61_p4, %p60_p3 }
   0xe   : > { %p84_p7 = scmp.eq.s32.totalorder %s655_s0, 1  ;;  %p90_p8 = scmp.eq.s32.totalorder %s446_s15, 1 }
   0xf   : > { %p474_p10 = scmp.lt.s32.totalorder %s608_s14, 2  ;;  %s113_s24 = sand.u32 1, %s604_s13  }
  0x10   : > { %p684_p11 = por %p84_p7, %p54_p0  ;;  %p688_p12 = por %p90_p8, %p60_p3 }
  0x11   : > { %s460_s25 = sshll.u32 %s608_s14, 13  ;;  %s449_s26 = sshll.u32 %s113_s24, 9 }
  0x12   : > { %s1001_s22 = scalar_select %p684_p11, 1, 0 }
  0x13   : > { %s1002_s23 = scalar_select %p688_p12, 1, 0 }
  0x14   : > { %s697_s29 = scalar_lea.hbm %s996_s1, %s460_s25  ;;  %s117_s30 = scalar_lea.vmem [#allocation3], %s449_s26 }
  0x15   : > { %s124_s3 = sshll.u32 %s117_s30, 4  ;;  %p701_p13 = pnand %p474_p10, %p673_p5  ;;  %s705_s3 = int_to_ptr.vmem [resolvable:$true] %s124_s3 }
  0x16   : > { %s707_s5 = scalar_lea.sflag [#allocation4], %s113_s24  ;;  %s512_s6 = scalar_lea.hbm %s697_s29, 8192 }
  0x17   : > { %p513_p0 = scmp.ne.s32.totalorder %s697_s29, %s512_s6  ;;  %p514_p1 = pneg %p701_p13 }
  0x18   : > { %s517_s9 = scalar_lea.hbm %s996_s1, 16384  ;;  %p518_p4 = scmp.lt.u32.totalorder %s697_s29, %s996_s1 }
  0x19   : > { %p515_p2 = pnand %p514_p1, %p513_p0  ;;  %p519_p5 = scmp.lt.u32.totalorder %s517_s9, %s512_s6 }
  0x1a   : > { %p521_p8 = scmp.lt.u32.totalorder %s512_s6, %s697_s29 }
  0x1b   : > { %p516_p3 = pneg %p515_p2  ;;  %p520_p7 = por %p519_p5, %p518_p4 }
  0x1d   : > { %p522_p10 = por %p521_p8, %p520_p7 }
  0x1f   : > { %p523_p9 = pnand %p522_p10, %p516_p3 }
  0x21   : > { %526 = shalt.err (!%p523_p9)
}
  0x22   : > { %s527_s17 = scalar_lea.vmem %s705_s3, 8192  ;;  %s610_s18 = smov [#allocation3]  }
  0x23   : > { %p528_p0 = scmp.ne.s32.totalorder %s705_s3, %s527_s17  ;;  %s532_s20 = sshll.u32 %s610_s18, 4  ;;  %s533_s20 = int_to_ptr.vmem [resolvable:$false] %s532_s20 }
  0x24   : > { %s534_s24 = scalar_lea.vmem %s533_s20, 16384  ;;  %p535_p11 = scmp.lt.s32.totalorder %s705_s3, %s533_s20 }
  0x25   : > { %p530_p2 = pnand %p528_p0, %p514_p1  ;;  %p536_p4 = scmp.lt.s32.totalorder %s534_s24, %s527_s17 }
  0x27   : > { %p531_p12 = pneg %p530_p2  ;;  %p537_p5 = por %p536_p4, %p535_p11 }
  0x29   : > { %p538_p7 = pnand %p537_p5, %p531_p12 }
  0x2b   : > { %541 = shalt.err (!%p538_p7)
}
  0x2c   : > { %s611_s25 = smov 128   ;;  %s612_s26 = smov 8  }
  0x2d   : > { %469 = dma.hbm_to_vmem [thread:$0]  (!%p701_p13), %s697_s29, 8192, %s705_s3, %s707_s5, %s611_s25, %s611_s25, %s612_s26  }
  0x2e   : > { %p452_p9 = scmp.ge.s32.totalorder %s608_s14, 1  ;;  %p132_p1 = scmp.lt.s32.totalorder %s608_s14, 3 }
  0x30   : > { %p133_p3 = pnand %p452_p9, %p132_p1 }
  0x31   : > { %s738_s27 = sand.u32 (!%p133_p3), 1, %s600_s12  }
  0x32   : > { %136 = sbr.rel (%p133_p3) target bundleno = 113 (0x71), region = 28  ;;  %s453_s28 = sshll.u32 (!%p133_p3), %s738_s27, 9 }
  0x33   : > { %s139_s30 = scalar_lea.sflag (!%p133_p3), [#allocation4], %s738_s27  ;;  %s742_s6 = scalar_lea.vmem (!%p133_p3), [#allocation3], %s453_s28 }
  0x39   : > { %587 = dma.done.wait (%p677_p6), %s139_s30, 8192  }
  0x3a   : > { %589 = vsyncadd (%p677_p6), %s139_s30, 4294959104  ;;  %s229_s29 = sld [smem:[#allocation2]]  ;;  %v165_v0 = vld [vmem:[%s742_s6] sm:$0xff]  ;;  %v166_v2 = vld [vmem:[%s742_s6 + $0x8] sm:$0xff]  ;;  %s765_s21 = scalar_lea.vmem [#allocation6], %s453_s28 }
  0x3b   : > { %v167_v3 = vld [vmem:[%s742_s6 + $0x10] sm:$0xff]  ;;  %v168_v7 = vld [vmem:[%s742_s6 + $0x18] sm:$0xff]  ;;  %v169_v8 = vld [vmem:[%s742_s6 + $0x20] sm:$0xff]  ;;  %s461_s3 = sshll.u32 %s655_s0, 13  ;;  %s373_s4 = sshll.u32 %s765_s21, 4  ;;  %s943_s4 = int_to_ptr.vmem [resolvable:$true] %s373_s4 }
  0x3c   : > { %v170_v9 = vld [vmem:[%s742_s6 + $0x28] sm:$0xff]  ;;  %v171_v13 = vld [vmem:[%s742_s6 + $0x30] sm:$0xff]  ;;  %v172_v14 = vld [vmem:[%s742_s6 + $0x38] sm:$0xff]  ;;  %s941_s7 = scalar_lea.hbm %s997_s2, %s461_s3  ;;  %s360_s8 = scalar_lea.sflag [#allocation5], %s738_s27 }
  0x3d   : > { %v173_v15 = vld [vmem:[%s742_s6 + $0x40] sm:$0xff]  ;;  %v174_v19 = vld [vmem:[%s742_s6 + $0x48] sm:$0xff]  ;;  %v175_v20 = vld [vmem:[%s742_s6 + $0x50] sm:$0xff]  ;;  %s542_s9 = scalar_lea.vmem %s943_s4, 8192  ;;  %p1004_p11 = scmp.ne.s32.totalorder %s1001_s22, 0 }
  0x3e   : > { %v176_v21 = vld [vmem:[%s742_s6 + $0x58] sm:$0xff]  ;;  %v177_v25 = vld [vmem:[%s742_s6 + $0x60] sm:$0xff]  ;;  %v178_v26 = vld [vmem:[%s742_s6 + $0x68] sm:$0xff]  ;;  %p543_p6 = scmp.ne.s32.totalorder %s943_s4, %s542_s9  ;;  %s613_s10 = smov [#allocation6]  }
  0x3f   : > { %v179_v27 = vld [vmem:[%s742_s6 + $0x70] sm:$0xff]  ;;  %v180_v31 = vld [vmem:[%s742_s6 + $0x78] sm:$0xff]  ;;  %v181_v32 = vld [vmem:[%s742_s6 + $0x80] sm:$0xff]  ;;  %s546_s15 = sshll.u32 %s613_s10, 4  ;;  %s547_s15 = int_to_ptr.vmem [resolvable:$false] %s546_s15 }
  0x40   : > { %v749_v1 = vstv %s229_s29  ;;  %v182_v33 = vld [vmem:[%s742_s6 + $0x88] sm:$0xff]  ;;  %v183_v37 = vld [vmem:[%s742_s6 + $0x90] sm:$0xff]  ;;  %v184_v38 = vld [vmem:[%s742_s6 + $0x98] sm:$0xff]  ;;  %p544_p12 = pnand %p543_p6, %p1004_p11  ;;  %s548_s17 = scalar_lea.vmem %s547_s15, 16384 }
  0x41   : > { %v231_v4 = vmul.f32 %v749_v1, %v165_v0  ;;  %v232_v5 = vmul.f32 %v749_v1, %v166_v2  ;;  %v233_v6 = vmul.f32 %v749_v1, %v167_v3  ;;  %v234_v10 = vmul.f32 %v749_v1, %v168_v7  ;;  %v185_v39 = vld [vmem:[%s742_s6 + $0xa0] sm:$0xff]  ;;  %v186_v43 = vld [vmem:[%s742_s6 + $0xa8] sm:$0xff]  ;;  %v187_v44 = vld [vmem:[%s742_s6 + $0xb0] sm:$0xff]  ;;  %p549_p8 = scmp.lt.s32.totalorder %s943_s4, %s547_s15  ;;  %p550_p10 = scmp.lt.s32.totalorder %s548_s17, %s542_s9 }
  0x42   : > { %v235_v11 = vmul.f32 %v749_v1, %v169_v8  ;;  %v236_v12 = vmul.f32 %v749_v1, %v170_v9  ;;  %v237_v16 = vmul.f32 %v749_v1, %v171_v13  ;;  %v238_v17 = vmul.f32 %v749_v1, %v172_v14  ;;  %v188_v45 = vld [vmem:[%s742_s6 + $0xb8] sm:$0xff]  ;;  %v189_v49 = vld [vmem:[%s742_s6 + $0xc0] sm:$0xff]  ;;  %v190_v50 = vld [vmem:[%s742_s6 + $0xc8] sm:$0xff]  ;;  %p545_p13 = pneg %p544_p12 }
  0x43   : > { %295 = vst [vmem:[%s765_s21] sm:$0xff] %v231_v4  ;;  %296 = vst [vmem:[%s765_s21 + $0x8] sm:$0xff] %v232_v5  ;;  %v239_v18 = vmul.f32 %v749_v1, %v173_v15  ;;  %v240_v22 = vmul.f32 %v749_v1, %v174_v19  ;;  %v241_v23 = vmul.f32 %v749_v1, %v175_v20  ;;  %v191_v51 = vld [vmem:[%s742_s6 + $0xd0] sm:$0xff]  ;;  %v192_v55 = vld [vmem:[%s742_s6 + $0xd8] sm:$0xff]  ;;  %p551_p0 = por %p550_p10, %p549_p8 }
  0x44   : > { %297 = vst [vmem:[%s765_s21 + $0x10] sm:$0xff] %v233_v6  ;;  %298 = vst [vmem:[%s765_s21 + $0x18] sm:$0xff] %v234_v10  ;;  %v242_v24 = vmul.f32 %v749_v1, %v176_v21  ;;  %v243_v28 = vmul.f32 %v749_v1, %v177_v25  ;;  %v244_v29 = vmul.f32 %v749_v1, %v178_v26  ;;  %v193_v56 = vld [vmem:[%s742_s6 + $0xe0] sm:$0xff]  ;;  %v194_v57 = vld [vmem:[%s742_s6 + $0xe8] sm:$0xff] }
  0x45   : > { %299 = vst [vmem:[%s765_s21 + $0x20] sm:$0xff] %v235_v11  ;;  %300 = vst [vmem:[%s765_s21 + $0x28] sm:$0xff] %v236_v12  ;;  %v245_v30 = vmul.f32 %v749_v1, %v179_v27  ;;  %v246_v34 = vmul.f32 %v749_v1, %v180_v31  ;;  %v247_v35 = vmul.f32 %v749_v1, %v181_v32  ;;  %v195_v61 = vld [vmem:[%s742_s6 + $0xf0] sm:$0xff]  ;;  %v196_v62 = vld [vmem:[%s742_s6 + $0xf8] sm:$0xff]  ;;  %p552_p2 = pnand %p551_p0, %p545_p13 }
  0x46   : > { %301 = vst [vmem:[%s765_s21 + $0x30] sm:$0xff] %v237_v16  ;;  %302 = vst [vmem:[%s765_s21 + $0x38] sm:$0xff] %v238_v17  ;;  %v248_v36 = vmul.f32 %v749_v1, %v182_v33  ;;  %v249_v40 = vmul.f32 %v749_v1, %v183_v37  ;;  %v250_v41 = vmul.f32 %v749_v1, %v184_v38  ;;  %v197_v63 = vld [vmem:[%s742_s6 + $0x100] sm:$0xff]  ;;  %v198_v4 = vld [vmem:[%s742_s6 + $0x108] sm:$0xff] }
  0x47   : > { %303 = vst [vmem:[%s765_s21 + $0x40] sm:$0xff] %v239_v18  ;;  %304 = vst [vmem:[%s765_s21 + $0x48] sm:$0xff] %v240_v22  ;;  %v251_v42 = vmul.f32 %v749_v1, %v185_v39  ;;  %v252_v46 = vmul.f32 %v749_v1, %v186_v43  ;;  %v253_v47 = vmul.f32 %v749_v1, %v187_v44  ;;  %v199_v5 = vld [vmem:[%s742_s6 + $0x110] sm:$0xff]  ;;  %v200_v6 = vld [vmem:[%s742_s6 + $0x118] sm:$0xff] }
  0x48   : > { %305 = vst [vmem:[%s765_s21 + $0x50] sm:$0xff] %v241_v23  ;;  %306 = vst [vmem:[%s765_s21 + $0x58] sm:$0xff] %v242_v24  ;;  %v254_v48 = vmul.f32 %v749_v1, %v188_v45  ;;  %v255_v52 = vmul.f32 %v749_v1, %v189_v49  ;;  %v256_v53 = vmul.f32 %v749_v1, %v190_v50  ;;  %v201_v10 = vld [vmem:[%s742_s6 + $0x120] sm:$0xff]  ;;  %v202_v11 = vld [vmem:[%s742_s6 + $0x128] sm:$0xff] }
  0x49   : > { %307 = vst [vmem:[%s765_s21 + $0x60] sm:$0xff] %v243_v28  ;;  %308 = vst [vmem:[%s765_s21 + $0x68] sm:$0xff] %v244_v29  ;;  %v257_v54 = vmul.f32 %v749_v1, %v191_v51  ;;  %v258_v58 = vmul.f32 %v749_v1, %v192_v55  ;;  %v259_v59 = vmul.f32 %v749_v1, %v193_v56  ;;  %v203_v12 = vld [vmem:[%s742_s6 + $0x130] sm:$0xff]  ;;  %v204_v16 = vld [vmem:[%s742_s6 + $0x138] sm:$0xff] }
  0x4a   : > { %309 = vst [vmem:[%s765_s21 + $0x70] sm:$0xff] %v245_v30  ;;  %310 = vst [vmem:[%s765_s21 + $0x78] sm:$0xff] %v246_v34  ;;  %v260_v60 = vmul.f32 %v749_v1, %v194_v57  ;;  %v261_v0 = vmul.f32 %v749_v1, %v195_v61  ;;  %v262_v2 = vmul.f32 %v749_v1, %v196_v62  ;;  %v205_v17 = vld [vmem:[%s742_s6 + $0x140] sm:$0xff]  ;;  %v206_v18 = vld [vmem:[%s742_s6 + $0x148] sm:$0xff] }
  0x4b   : > { %311 = vst [vmem:[%s765_s21 + $0x80] sm:$0xff] %v247_v35  ;;  %312 = vst [vmem:[%s765_s21 + $0x88] sm:$0xff] %v248_v36  ;;  %v263_v3 = vmul.f32 %v749_v1, %v197_v63  ;;  %v264_v7 = vmul.f32 %v749_v1, %v198_v4  ;;  %v265_v8 = vmul.f32 %v749_v1, %v199_v5  ;;  %v207_v22 = vld [vmem:[%s742_s6 + $0x150] sm:$0xff]  ;;  %v208_v23 = vld [vmem:[%s742_s6 + $0x158] sm:$0xff] }
  0x4c   : > { %313 = vst [vmem:[%s765_s21 + $0x90] sm:$0xff] %v249_v40  ;;  %314 = vst [vmem:[%s765_s21 + $0x98] sm:$0xff] %v250_v41  ;;  %v266_v9 = vmul.f32 %v749_v1, %v200_v6  ;;  %v267_v13 = vmul.f32 %v749_v1, %v201_v10  ;;  %v268_v14 = vmul.f32 %v749_v1, %v202_v11  ;;  %v209_v24 = vld [vmem:[%s742_s6 + $0x160] sm:$0xff]  ;;  %v210_v28 = vld [vmem:[%s742_s6 + $0x168] sm:$0xff] }
  0x4d   : > { %315 = vst [vmem:[%s765_s21 + $0xa0] sm:$0xff] %v251_v42  ;;  %316 = vst [vmem:[%s765_s21 + $0xa8] sm:$0xff] %v252_v46  ;;  %v269_v15 = vmul.f32 %v749_v1, %v203_v12  ;;  %v270_v19 = vmul.f32 %v749_v1, %v204_v16  ;;  %v271_v20 = vmul.f32 %v749_v1, %v205_v17  ;;  %v211_v29 = vld [vmem:[%s742_s6 + $0x170] sm:$0xff]  ;;  %v212_v30 = vld [vmem:[%s742_s6 + $0x178] sm:$0xff] }
  0x4e   : > { %317 = vst [vmem:[%s765_s21 + $0xb0] sm:$0xff] %v253_v47  ;;  %318 = vst [vmem:[%s765_s21 + $0xb8] sm:$0xff] %v254_v48  ;;  %v272_v21 = vmul.f32 %v749_v1, %v206_v18  ;;  %v273_v25 = vmul.f32 %v749_v1, %v207_v22  ;;  %v274_v26 = vmul.f32 %v749_v1, %v208_v23  ;;  %v213_v34 = vld [vmem:[%s742_s6 + $0x180] sm:$0xff]  ;;  %v214_v35 = vld [vmem:[%s742_s6 + $0x188] sm:$0xff] }
  0x4f   : > { %319 = vst [vmem:[%s765_s21 + $0xc0] sm:$0xff] %v255_v52  ;;  %320 = vst [vmem:[%s765_s21 + $0xc8] sm:$0xff] %v256_v53  ;;  %v275_v27 = vmul.f32 %v749_v1, %v209_v24  ;;  %v276_v31 = vmul.f32 %v749_v1, %v210_v28  ;;  %v277_v32 = vmul.f32 %v749_v1, %v211_v29  ;;  %v215_v36 = vld [vmem:[%s742_s6 + $0x190] sm:$0xff]  ;;  %v216_v40 = vld [vmem:[%s742_s6 + $0x198] sm:$0xff] }
  0x50   : > { %321 = vst [vmem:[%s765_s21 + $0xd0] sm:$0xff] %v257_v54  ;;  %322 = vst [vmem:[%s765_s21 + $0xd8] sm:$0xff] %v258_v58  ;;  %v278_v33 = vmul.f32 %v749_v1, %v212_v30  ;;  %v279_v37 = vmul.f32 %v749_v1, %v213_v34  ;;  %v280_v38 = vmul.f32 %v749_v1, %v214_v35  ;;  %v217_v41 = vld [vmem:[%s742_s6 + $0x1a0] sm:$0xff]  ;;  %v218_v42 = vld [vmem:[%s742_s6 + $0x1a8] sm:$0xff] }
  0x51   : > { %323 = vst [vmem:[%s765_s21 + $0xe0] sm:$0xff] %v259_v59  ;;  %324 = vst [vmem:[%s765_s21 + $0xe8] sm:$0xff] %v260_v60  ;;  %v281_v39 = vmul.f32 %v749_v1, %v215_v36  ;;  %v282_v43 = vmul.f32 %v749_v1, %v216_v40  ;;  %v283_v44 = vmul.f32 %v749_v1, %v217_v41  ;;  %v219_v46 = vld [vmem:[%s742_s6 + $0x1b0] sm:$0xff]  ;;  %v220_v47 = vld [vmem:[%s742_s6 + $0x1b8] sm:$0xff] }
  0x52   : > { %325 = vst [vmem:[%s765_s21 + $0xf0] sm:$0xff] %v261_v0  ;;  %326 = vst [vmem:[%s765_s21 + $0xf8] sm:$0xff] %v262_v2  ;;  %v284_v45 = vmul.f32 %v749_v1, %v218_v42  ;;  %v221_v48 = vld [vmem:[%s742_s6 + $0x1c0] sm:$0xff]  ;;  %v285_v49 = vmul.f32 %v749_v1, %v219_v46  ;;  %v286_v50 = vmul.f32 %v749_v1, %v220_v47  ;;  %v222_v52 = vld [vmem:[%s742_s6 + $0x1c8] sm:$0xff] }
  0x53   : > { %327 = vst [vmem:[%s765_s21 + $0x100] sm:$0xff] %v263_v3  ;;  %328 = vst [vmem:[%s765_s21 + $0x108] sm:$0xff] %v264_v7  ;;  %v287_v51 = vmul.f32 %v749_v1, %v221_v48  ;;  %v223_v53 = vld [vmem:[%s742_s6 + $0x1d0] sm:$0xff]  ;;  %v224_v54 = vld [vmem:[%s742_s6 + $0x1d8] sm:$0xff]  ;;  %v288_v55 = vmul.f32 %v749_v1, %v222_v52 }
  0x54   : > { %329 = vst [vmem:[%s765_s21 + $0x110] sm:$0xff] %v265_v8  ;;  %330 = vst [vmem:[%s765_s21 + $0x118] sm:$0xff] %v266_v9  ;;  %v289_v56 = vmul.f32 %v749_v1, %v223_v53  ;;  %v290_v57 = vmul.f32 %v749_v1, %v224_v54  ;;  %v225_v58 = vld [vmem:[%s742_s6 + $0x1e0] sm:$0xff]  ;;  %v226_v59 = vld [vmem:[%s742_s6 + $0x1e8] sm:$0xff] }
  0x55   : > { %331 = vst [vmem:[%s765_s21 + $0x120] sm:$0xff] %v267_v13  ;;  %332 = vst [vmem:[%s765_s21 + $0x128] sm:$0xff] %v268_v14  ;;  %v227_v60 = vld [vmem:[%s742_s6 + $0x1f0] sm:$0xff]  ;;  %v291_v61 = vmul.f32 %v749_v1, %v225_v58  ;;  %v292_v62 = vmul.f32 %v749_v1, %v226_v59  ;;  %v228_v0 = vld [vmem:[%s742_s6 + $0x1f8] sm:$0xff] }
  0x56   : > { %333 = vst [vmem:[%s765_s21 + $0x130] sm:$0xff] %v269_v15  ;;  %334 = vst [vmem:[%s765_s21 + $0x138] sm:$0xff] %v270_v19  ;;  %v293_v63 = vmul.f32 %v749_v1, %v227_v60  ;;  %v294_v2 = vmul.f32 %v749_v1, %v228_v0 }
  0x57   : > { %335 = vst [vmem:[%s765_s21 + $0x140] sm:$0xff] %v271_v20  ;;  %336 = vst [vmem:[%s765_s21 + $0x148] sm:$0xff] %v272_v21 }
  0x58   : > { %337 = vst [vmem:[%s765_s21 + $0x150] sm:$0xff] %v273_v25  ;;  %338 = vst [vmem:[%s765_s21 + $0x158] sm:$0xff] %v274_v26 }
  0x59   : > { %339 = vst [vmem:[%s765_s21 + $0x160] sm:$0xff] %v275_v27  ;;  %340 = vst [vmem:[%s765_s21 + $0x168] sm:$0xff] %v276_v31 }
  0x5a   : > { %341 = vst [vmem:[%s765_s21 + $0x170] sm:$0xff] %v277_v32  ;;  %342 = vst [vmem:[%s765_s21 + $0x178] sm:$0xff] %v278_v33 }
  0x5b   : > { %343 = vst [vmem:[%s765_s21 + $0x180] sm:$0xff] %v279_v37  ;;  %344 = vst [vmem:[%s765_s21 + $0x188] sm:$0xff] %v280_v38 }
  0x5c   : > { %345 = vst [vmem:[%s765_s21 + $0x190] sm:$0xff] %v281_v39  ;;  %346 = vst [vmem:[%s765_s21 + $0x198] sm:$0xff] %v282_v43 }
  0x5d   : > { %347 = vst [vmem:[%s765_s21 + $0x1a0] sm:$0xff] %v283_v44  ;;  %348 = vst [vmem:[%s765_s21 + $0x1a8] sm:$0xff] %v284_v45 }
  0x5e   : > { %349 = vst [vmem:[%s765_s21 + $0x1b0] sm:$0xff] %v285_v49  ;;  %350 = vst [vmem:[%s765_s21 + $0x1b8] sm:$0xff] %v286_v50 }
  0x5f   : > { %351 = vst [vmem:[%s765_s21 + $0x1c0] sm:$0xff] %v287_v51  ;;  %352 = vst [vmem:[%s765_s21 + $0x1c8] sm:$0xff] %v288_v55 }
  0x60   : > { %353 = vst [vmem:[%s765_s21 + $0x1d0] sm:$0xff] %v289_v56  ;;  %354 = vst [vmem:[%s765_s21 + $0x1d8] sm:$0xff] %v290_v57 }
  0x61   : > { %355 = vst [vmem:[%s765_s21 + $0x1e0] sm:$0xff] %v291_v61  ;;  %356 = vst [vmem:[%s765_s21 + $0x1e8] sm:$0xff] %v292_v62 }
  0x62   : > { %357 = vst [vmem:[%s765_s21 + $0x1f0] sm:$0xff] %v293_v63  ;;  %358 = vst [vmem:[%s765_s21 + $0x1f8] sm:$0xff] %v294_v2 }
  0x63   : > { %555 = shalt.err (!%p552_p2)
}
  0x64   : > { %s556_s18 = scalar_lea.hbm %s941_s7, 8192  ;;  %s560_s25 = scalar_lea.hbm %s997_s2, 16384 }
  0x65   : > { %p557_p4 = scmp.ne.s32.totalorder %s941_s7, %s556_s18  ;;  %p561_p9 = scmp.lt.u32.totalorder %s941_s7, %s997_s2 }
  0x66   : > { %p562_p1 = scmp.lt.u32.totalorder %s560_s25, %s556_s18  ;;  %p564_p6 = scmp.lt.u32.totalorder %s556_s18, %s941_s7 }
  0x67   : > { %p558_p5 = pnand %p557_p4, %p1004_p11 }
  0x68   : > { %p563_p3 = por %p562_p1, %p561_p9 }
  0x69   : > { %p559_p7 = pneg %p558_p5 }
  0x6a   : > { %p565_p12 = por %p564_p6, %p563_p3 }
  0x6c   : > { %p566_p13 = pnand %p565_p12, %p559_p7 }
  0x6e   : > { %569 = shalt.err (!%p566_p13)
}
  0x6f   : > { %s614_s30 = smov 128   ;;  %s615_s6 = smov 8  }
  0x70   : > { %464 = dma.vmem_to_hbm [thread:$0]  (%p1004_p11), %s943_s4, 8192, %s941_s7, %s360_s8, %s614_s30, %s614_s30, %s615_s6  }
  0x71 PF: > { %s388_s29 = sand.u32 1, %s596_s11   ;;  %p1005_p8 = scmp.ne.s32.totalorder %s1002_s23, 0 }
  0x72   : > { %p1006_p10 = scmp.ge.s32.totalorder %s608_s14, 2  ;;  %s389_s21 = scalar_lea.sflag [#allocation5], %s388_s29 }
  0x74   : > { %p471_p0 = pnand %p1006_p10, %p1005_p8 }
  0x76   : > { %591 = dma.done.wait (!%p471_p0), %s389_s21, 8192  }
  0x77   : > { %593 = vsyncadd (!%p471_p0), %s389_s21, 4294959104  ;;  %p16_p2 = scmp.ge.s32.totalorder %s659_s16, 4   ;;  %s1007_s11 = smov %s600_s12 }
  0x78   : > { %s1008_s12 = smov %s604_s13  ;;  %s1009_s13 = smov %s671_s19 }
  0x79   : > { %s1010_s14 = smov %s659_s16  ;;  %18 = sbr.rel (!%p16_p2) target bundleno = 7 (0x7), region = 73 }
  0x80   :  { %394 = vsyncpa [#allocation4], 1 }
  0x81   :  { %396 = vsyncpa [#allocation4 + $0x1], 1 }
  0x82   :  { %397 = vsyncpa [#allocation5], 1 }
  0x83   :  { %399 = vsyncpa [#allocation5 + $0x1], 1 }

</bundles_post_ra>
